<compile_context>
chip_gen: v7x
topology: tpu7x:2x2x1
jax: 0.10.0
libtpu: 0.0.40
codegen_flags: <defaults>
</compile_context>

<pallas_src>
import functools

import jax
import jax.numpy as jnp
from jax.experimental import pallas as pl
from jax.experimental.pallas import tpu as pltpu


def _focal_loss_kernel(x_ref, t_ref, o_ref, *, alpha, gamma, logits,
                       reduce_mean, needs_mask, rem_valid):
    x = x_ref[...].astype(jnp.float32)
    t = t_ref[...].astype(jnp.float32)

    if logits:
        # Numerically stable BCE-with-logits:
        #   max(x, 0) - x*t + log(1 + exp(-|x|))
        bce = jnp.maximum(x, 0.0) - x * t + jnp.log1p(jnp.exp(-jnp.abs(x)))
    else:
        # PyTorch's binary_cross_entropy clamps the log terms at -100.
        log_p = jnp.maximum(jnp.log(x), -100.0)
        log_1mp = jnp.maximum(jnp.log1p(-x), -100.0)
        bce = -(t * log_p + (1.0 - t) * log_1mp)

    pt = jnp.exp(-bce)
    om = 1.0 - pt

    # (1 - pt) ** gamma: plain multiplies for small integer gamma avoids a
    # log+exp pair per element on the EUP; fall back to pow otherwise.
    if float(gamma) == int(gamma) and 0 <= int(gamma) <= 16:
        gi = int(gamma)
        if gi == 0:
            mod = jnp.ones_like(om)
        else:
            mod = om
            for _ in range(gi - 1):
                mod = mod * om
    else:
        mod = om ** gamma

    f_loss = mod * bce
    if alpha != 1.0:
        f_loss = alpha * f_loss

    if not reduce_mean:
        # Non-reduce path: OOB rows of a boundary block are dropped by Pallas,
        # so garbage computed on overhang rows never reaches HBM.
        o_ref[...] = f_loss.astype(o_ref.dtype)
        return

    if not needs_mask:
        o_ref[...] = jnp.full(o_ref.shape, jnp.sum(f_loss), jnp.float32)
        return

    last = pl.num_programs(0) - 1

    @pl.when(pl.program_id(0) != last)
    def _():
        o_ref[...] = jnp.full(o_ref.shape, jnp.sum(f_loss), jnp.float32)

    @pl.when(pl.program_id(0) == last)
    def _():
        # Only the last tile carries padding / row-overhang garbage; mask it
        # with a *local* flat index against a compile-time remainder.
        tm_, cols = f_loss.shape
        row = jax.lax.broadcasted_iota(jnp.int32, (tm_, cols), 0)
        col = jax.lax.broadcasted_iota(jnp.int32, (tm_, cols), 1)
        local_idx = row * cols + col
        masked = jnp.where(local_idx < rem_valid, f_loss, 0.0)
        o_ref[...] = jnp.full(o_ref.shape, jnp.sum(masked), jnp.float32)


_LANES = 512          # lane (last) dim of each tile: multiple of 128
_MAX_TILE_ROWS = 1024  # 1024 x 512 f32 = 2 MiB per-input block (safe on v5e too)
_ROW_ALIGN = 16        # bf16 sublane packing


def _cdiv(a, b):
    return -(-a // b)


def _round_up(a, b):
    return _cdiv(a, b) * b


def focal_loss(inputs, targets, *, alpha=1.0, gamma=2.0, logits=False,
               reduce=True):
    """Pallas implementation of FocalLoss.forward (defaults match the module)."""
    orig_shape = inputs.shape
    orig_dtype = inputs.dtype

    n = 1
    for d in orig_shape:
        n *= int(d)

    lanes = _LANES
    rows = max(1, _cdiv(n, lanes))
    lane_padded = rows * lanes

    x_flat = inputs.reshape(-1)
    t_flat = targets.reshape(-1)
    if lane_padded != n:
        # TODO(synk): lane-ragged sizes (n % 512 != 0) pay one extra HBM pass
        # for the pad; common NCHW sizes skip this branch entirely.
        x_flat = jnp.pad(x_flat, (0, lane_padded - n))
        t_flat = jnp.pad(t_flat, (0, lane_padded - n))
    x2 = x_flat.reshape(rows, lanes)
    t2 = t_flat.reshape(rows, lanes)

    if rows <= _ROW_ALIGN:
        # Tiny input: single full-extent tile (block dim == array dim is legal
        # even when not a multiple of 8).
        tm = rows
    else:
        # Aim for >= 2 grid steps (keeps both v7x TensorCores busy), rows
        # aligned to 16 for bf16 packing, capped at a 2 MiB f32 block.
        tm = min(_MAX_TILE_ROWS, _round_up(_cdiv(rows, 2), _ROW_ALIGN))
    num_tiles = _cdiv(rows, tm)

    block_elems = tm * lanes
    covered = num_tiles * block_elems
    needs_mask = covered != n
    rem_valid = n - (num_tiles - 1) * block_elems  # valid elems in last tile

    kernel = functools.partial(
        _focal_loss_kernel,
        alpha=float(alpha),
        gamma=float(gamma),
        logits=bool(logits),
        reduce_mean=bool(reduce),
        needs_mask=bool(needs_mask),
        rem_valid=int(rem_valid),
    )

    in_spec = pl.BlockSpec((tm, lanes), lambda i: (i, 0))

    if reduce:
        # One lane-dense (1, 1, 128) partial-sum row per tile.
        out_shape = jax.ShapeDtypeStruct((num_tiles, 1, 128), jnp.float32)
        out_spec = pl.BlockSpec((1, 1, 128), lambda i: (i, 0, 0))
    else:
        out_shape = jax.ShapeDtypeStruct((rows, lanes), orig_dtype)
        out_spec = pl.BlockSpec((tm, lanes), lambda i: (i, 0))

    out = pl.pallas_call(
        kernel,
        out_shape=out_shape,
        grid=(num_tiles,),
        in_specs=[in_spec, in_spec],
        out_specs=out_spec,
        compiler_params=pltpu.CompilerParams(
            dimension_semantics=("parallel",),
            vmem_limit_bytes=32 * 1024 * 1024),
    )(x2, t2)

    if reduce:
        return jnp.sum(out[:, 0, 0]) / jnp.float32(n)
    if lane_padded != n:
        return out.reshape(-1)[:n].reshape(orig_shape)
    return out.reshape(orig_shape)


def _focal_loss_ref(inputs, targets, alpha=1.0, gamma=2.0, logits=False,
                    reduce=True):
    """Pure-JAX reference for correctness check."""
    x = inputs.astype(jnp.float32)
    t = targets.astype(jnp.float32)
    if logits:
        bce = jnp.maximum(x, 0.0) - x * t + jnp.log1p(jnp.exp(-jnp.abs(x)))
    else:
        bce = -(t * jnp.maximum(jnp.log(x), -100.0)
                + (1.0 - t) * jnp.maximum(jnp.log1p(-x), -100.0))
    pt = jnp.exp(-bce)
    f = alpha * (1.0 - pt) ** gamma * bce
    return jnp.mean(f) if reduce else f


if __name__ == "__main__":
    key = jax.random.PRNGKey(0)
    k1, k2, k3, k4 = jax.random.split(key, 4)

    # Small NCHW-shaped segmentation-style inputs: probabilities + binary masks.
    shape = (2, 4, 16, 16)
    logits_in = jax.random.normal(k1, shape, dtype=jnp.float32)
    probs = jax.nn.sigmoid(logits_in)
    targets = (jax.random.uniform(k2, shape) > 0.5).astype(jnp.float32)

    # Default module configuration: alpha=1, gamma=2, logits=False, reduce=True.
    loss = focal_loss(probs, targets, alpha=1.0, gamma=2.0, logits=False,
                      reduce=True)
    loss = jax.block_until_ready(loss)
    ref = _focal_loss_ref(probs, targets)
    assert jnp.allclose(loss, ref, rtol=1e-5, atol=1e-6), (loss, ref)

    # Non-reduced path (lane-exact: no pad, no slice).
    per_elem = focal_loss(probs, targets, reduce=False)
    per_elem = jax.block_until_ready(per_elem)
    ref_elem = _focal_loss_ref(probs, targets, reduce=False)
    assert per_elem.shape == shape
    assert jnp.allclose(per_elem, ref_elem, rtol=1e-5, atol=1e-6)

    # Logits path with reduction.
    loss_lg = focal_loss(logits_in, targets, logits=True, reduce=True)
    loss_lg = jax.block_until_ready(loss_lg)
    ref_lg = _focal_loss_ref(logits_in, targets, logits=True, reduce=True)
    assert jnp.allclose(loss_lg, ref_lg, rtol=1e-5, atol=1e-6), (loss_lg, ref_lg)

    # Multi-tile case with a row-overhanging last block (n % 512 == 0 but the
    # row count is not a multiple of the tile): exercises the last-tile mask
    # and the dropped OOB writes, still without any wrapper-side pad/slice.
    shape2 = (2, 4, 40, 64)   # 20480 elems -> 40 rows, 2 tiles of 32 rows
    lg2 = jax.random.normal(k3, shape2, dtype=jnp.float32)
    p2 = jax.nn.sigmoid(lg2)
    t2 = (jax.random.uniform(k4, shape2) > 0.5).astype(jnp.float32)
    l2 = jax.block_until_ready(focal_loss(p2, t2, reduce=True))
    assert jnp.allclose(l2, _focal_loss_ref(p2, t2), rtol=1e-5, atol=1e-6)
    pe2 = jax.block_until_ready(focal_loss(lg2, t2, logits=True, reduce=False))
    assert pe2.shape == shape2
    assert jnp.allclose(pe2, _focal_loss_ref(lg2, t2, logits=True, reduce=False),
                        rtol=1e-5, atol=1e-6)

    # Lane-ragged fallback (n % 512 != 0): pad path + masked reduction.
    shape3 = (3, 5, 16, 16)   # 3840 elems
    lg3 = jax.random.normal(k3, shape3, dtype=jnp.float32)
    t3 = (jax.random.uniform(k4, shape3) > 0.5).astype(jnp.float32)
    l3 = jax.block_until_ready(focal_loss(lg3, t3, logits=True, reduce=True))
    assert jnp.allclose(l3, _focal_loss_ref(lg3, t3, logits=True), rtol=1e-5,
                        atol=1e-6)

    print("KERNEL_OK")
</pallas_src>

<mosaic_0001>
module attributes {stable_mosaic.version = 11 : i64} {
  func.func @_focal_loss_kernel(%arg0: i32, %arg1: memref<4x512xf32, #tpu.memory_space<vmem>>, %arg2: memref<4x512xf32, #tpu.memory_space<vmem>>, %arg3: memref<1x1x128xf32, #tpu.memory_space<vmem>>) attributes {dimension_semantics = [#tpu.dimension_semantics<parallel>], iteration_bounds = array<i64: 1>, scalar_prefetch = 0 : i64, scratch_operands = 0 : i64, tpu.core_type = #tpu.core_type<tc>, window_params = [{transform_indices = @transform_0, window_bounds = array<i64: 4, 512>}, {transform_indices = @transform_1, window_bounds = array<i64: 4, 512>}, {transform_indices = @transform_2, window_bounds = array<i64: 1, 1, 128>}]} {
    %c0 = arith.constant 0 : index
    %c0_0 = arith.constant 0 : index
    %0 = vector.load %arg1[%c0, %c0_0] : memref<4x512xf32, #tpu.memory_space<vmem>>, vector<4x512xf32>
    %c0_1 = arith.constant 0 : index
    %c0_2 = arith.constant 0 : index
    %1 = vector.load %arg2[%c0_1, %c0_2] : memref<4x512xf32, #tpu.memory_space<vmem>>, vector<4x512xf32>
    %2 = math.log %0 : vector<4x512xf32>
    %cst = arith.constant -1.000000e+02 : f32
    %3 = vector.broadcast %cst : f32 to vector<4x512xf32>
    %4 = arith.maximumf %2, %3 : vector<4x512xf32>
    %cst_3 = arith.constant 0.000000e+00 : f32
    %5 = vector.broadcast %cst_3 : f32 to vector<4x512xf32>
    %6 = arith.subf %5, %0 : vector<4x512xf32>
    %7 = math.log1p %6 : vector<4x512xf32>
    %cst_4 = arith.constant -1.000000e+02 : f32
    %8 = vector.broadcast %cst_4 : f32 to vector<4x512xf32>
    %9 = arith.maximumf %7, %8 : vector<4x512xf32>
    %10 = arith.mulf %1, %4 : vector<4x512xf32>
    %cst_5 = arith.constant 1.000000e+00 : f32
    %11 = vector.broadcast %cst_5 : f32 to vector<4x512xf32>
    %12 = arith.subf %11, %1 : vector<4x512xf32>
    %13 = arith.mulf %12, %9 : vector<4x512xf32>
    %14 = arith.addf %10, %13 : vector<4x512xf32>
    %cst_6 = arith.constant 0.000000e+00 : f32
    %15 = vector.broadcast %cst_6 : f32 to vector<4x512xf32>
    %16 = arith.subf %15, %14 : vector<4x512xf32>
    %cst_7 = arith.constant 0.000000e+00 : f32
    %17 = vector.broadcast %cst_7 : f32 to vector<4x512xf32>
    %18 = arith.subf %17, %16 : vector<4x512xf32>
    %19 = math.exp %18 : vector<4x512xf32>
    %cst_8 = arith.constant 1.000000e+00 : f32
    %20 = vector.broadcast %cst_8 : f32 to vector<4x512xf32>
    %21 = arith.subf %20, %19 : vector<4x512xf32>
    %22 = arith.mulf %21, %21 : vector<4x512xf32>
    %23 = arith.mulf %22, %16 : vector<4x512xf32>
    %24 = vector.shape_cast %23 : vector<4x512xf32> to vector<1x4x512xf32>
    %cst_9 = arith.constant dense<0.000000e+00> : vector<1xf32>
    %25 = vector.multi_reduction <add>, %24, %cst_9 [1, 2] : vector<1x4x512xf32> to vector<1xf32>
    %26 = vector.shape_cast %25 : vector<1xf32> to vector<1x1x1xf32>
    %27 = vector.extract %26[0, 0, 0] : f32 from vector<1x1x1xf32>
    %28 = vector.broadcast %27 : f32 to vector<1x1x128xf32>
    %c0_10 = arith.constant 0 : index
    %c0_11 = arith.constant 0 : index
    %c0_12 = arith.constant 0 : index
    %29 = vector.load %arg3[%c0_10, %c0_11, %c0_12] : memref<1x1x128xf32, #tpu.memory_space<vmem>>, vector<1x1x128xf32>
    tpu.vector_store %arg3[%c0_10, %c0_11, %c0_12], %28 {strides = array<i32>} : memref<1x1x128xf32, #tpu.memory_space<vmem>>, vector<1x1x128xf32>,
    return
  }
  func.func @transform_0(%arg0: i32) -> (i32, i32) {
    %c0_i32 = arith.constant 0 : i32
    %c0_i32_0 = arith.constant 0 : i32
    return %arg0, %c0_i32 : i32, i32
  }
  func.func @transform_1(%arg0: i32) -> (i32, i32) {
    %c0_i32 = arith.constant 0 : i32
    %c0_i32_0 = arith.constant 0 : i32
    return %arg0, %c0_i32 : i32, i32
  }
  func.func @transform_2(%arg0: i32) -> (i32, i32, i32) {
    %c0_i32 = arith.constant 0 : i32
    %c0_i32_0 = arith.constant 0 : i32
    %c0_i32_1 = arith.constant 0 : i32
    return %arg0, %c0_i32, %c0_i32_0 : i32, i32, i32
  }
}

</mosaic_0001>

<bundles_post_ra>
// kernel: tpu_custom_call.1
= control target key start
LH: loop header
LB: loop body
LE: loop exit
PB: predicated region body
PF: predicated region fallthrough
CT: control target
= control target key end

     0   :  { %7 = vsyncpa [#allocation3], 0  ;;  %s274_s0 = inlined_call_operand.hbm [shape: f32[4,512], index: 0, kind: input, shape index: {}]   ;;  %s275_s1 = inlined_call_operand.hbm [shape: f32[4,512], index: 1, kind: input, shape index: {}]   ;;  %s276_s2 = inlined_call_operand.hbm [shape: f32[1,1,128], index: 2, kind: output, shape index: {}]  }
   0x1   :  { %8 = vsyncpa [#allocation6], 0 }
   0x2   :  { %9 = vsyncpa [#allocation4], 0  ;;  %s220_s9 = smov [#allocation2]   ;;  %s221_s11 = smov [#allocation5]  }
   0x3   :  { %s16_s10 = sshll.u32 %s220_s9, 4  ;;  %s26_s12 = sshll.u32 %s221_s11, 4  ;;  %s17_s10 = int_to_ptr.vmem [resolvable:$true] %s16_s10  ;;  %s27_s12 = int_to_ptr.vmem [resolvable:$true] %s26_s12 }
   0x4   :  { %s148_s15 = scalar_lea.hbm %s274_s0, 256 }
   0x5   :  { %p149_p0 = scmp.ne.s32.totalorder %s274_s0, %s148_s15  ;;  %p152_p1 = scmp.lt.u32.totalorder %s148_s15, %s274_s0 }
   0x7   :  { %p154_p2 = pnand %p152_p1, %p149_p0 }
   0x9   :  { %157 = shalt.err (!%p154_p2)
}
   0xa   :  { %s158_s20 = scalar_lea.vmem %s17_s10, 256  ;;  %p163_p4 = scmp.lt.s32.totalorder %s17_s10, %s17_s10 }
   0xb   :  { %p159_p3 = scmp.ne.s32.totalorder %s17_s10, %s158_s20  ;;  %p164_p5 = scmp.lt.s32.totalorder %s158_s20, %s158_s20 }
   0xd   :  { %p165_p6 = por %p164_p5, %p163_p4 }
   0xf   :  { %p166_p7 = pnand %p165_p6, %p159_p3 }
  0x11   :  { %169 = shalt.err (!%p166_p7)
}
  0x12   :  { %19 = dma.hbm_to_vmem [thread:$0]  %s274_s0, 256, %s17_s10, [#allocation3]  }
  0x13   :  { %s170_s25 = scalar_lea.hbm %s275_s1, 256 }
  0x14   :  { %p171_p8 = scmp.ne.s32.totalorder %s275_s1, %s170_s25  ;;  %p174_p9 = scmp.lt.u32.totalorder %s170_s25, %s275_s1 }
  0x16   :  { %p176_p10 = pnand %p174_p9, %p171_p8 }
  0x18   :  { %179 = shalt.err (!%p176_p10)
}
  0x19   :  { %s180_s30 = scalar_lea.vmem %s27_s12, 256  ;;  %p185_p12 = scmp.lt.s32.totalorder %s27_s12, %s27_s12 }
  0x1a   :  { %p181_p11 = scmp.ne.s32.totalorder %s27_s12, %s180_s30  ;;  %p186_p13 = scmp.lt.s32.totalorder %s180_s30, %s180_s30 }
  0x1c   :  { %p187_p0 = por %p186_p13, %p185_p12 }
  0x1e   :  { %p188_p1 = pnand %p187_p0, %p181_p11 }
  0x20   :  { %191 = shalt.err (!%p188_p1)
}
  0x21   :  { %29 = dma.hbm_to_vmem [thread:$0]  %s275_s1, 256, %s27_s12, [#allocation6]  }
  0x22   :  { %214 = dma.done.wait [#allocation3], 256  }
  0x23   :  { %215 = vsyncadd [#allocation3], 4294967040 }
  0x24   :  { %216 = dma.done.wait [#allocation6], 256  }
  0x25   :  { %217 = vsyncadd [#allocation6], 4294967040  ;;  %v36_v0 = vld [vmem:[#allocation2] sm:$0xff]  ;;  %v37_v1 = vld [vmem:[#allocation2 + $0x8] sm:$0xff]  ;;  %vm96_vm2 = vcmask 1043456   ;;  %s222_s1 = smov [#allocation7]  }
  0x26   :  { %136 = vlog2.f32 %v36_v0  ;;  %v46_v2 = vsub.f32 0.0, %v36_v0  ;;  %v47_v3 = vsub.f32 0.0, %v37_v1  ;;  %v38_v16 = vld [vmem:[#allocation5] sm:$0xff]  ;;  %v39_v19 = vld [vmem:[#allocation5 + $0x8] sm:$0xff]  ;;  %s121_s4 = sshll.u32 %s222_s1, 4  ;;  %s122_s4 = int_to_ptr.vmem [resolvable:$true] %s121_s4 }
  0x27   :  { %138 = vlog2.f32 %v37_v1  ;;  %v70_v26 = vsub.f32 1.0, %v38_v16  ;;  %v71_v28 = vsub.f32 1.0, %v39_v19  ;;  %s192_s6 = scalar_lea.vmem %s122_s4, 16  ;;  %s196_s7 = scalar_lea.vmem %s122_s4, 32 }
  0x28   :  { %v48_v4 = vadd.f32 1.0, %v46_v2  ;;  %v57_v5 = vadd.f32 1.0, %v47_v3  ;;  %v51_v6 = vmul.f32 -0.5, %v46_v2  ;;  %v60_v7 = vmul.f32 -0.5, %v47_v3  ;;  %p193_p2 = scmp.ne.s32.totalorder %s122_s4, %s192_s6  ;;  %p197_p3 = scmp.lt.s32.totalorder %s122_s4, %s122_s4 }
  0x29   :  { %v54_v10 = vand.u32 2147483647, %v46_v2  ;;  %v63_v14 = vand.u32 2147483647, %v47_v3  ;;  %p198_p4 = scmp.lt.s32.totalorder %s196_s7, %s192_s6 }
  0x2a   :  { %140 = vlog2.f32 %v48_v4  ;;  %v52_v8 = vadd.f32 1.0, %v51_v6  ;;  %v61_v11 = vadd.f32 1.0, %v60_v7 }
  0x2b   :  { %142 = vlog2.f32 %v57_v5  ;;  %vm55_vm0 = vcmp.lt.f32.partialorder %v54_v10, 0.0004427343  ;;  %vm64_vm1 = vcmp.lt.f32.partialorder %v63_v14, 0.0004427343  ;;  %p199_p5 = por %p198_p4, %p197_p3 }
  0x2c   :  { %v53_v17 = vmul.f32 %v52_v8, %v46_v2  ;;  %v62_v21 = vmul.f32 %v61_v11, %v47_v3 }
  0x2d   :  { %p200_p6 = pnand %p199_p5, %p193_p2 }
  0x30   :  { %v137_v9 = vpop.eup %136 }
  0x31   :  { %v139_v12 = vpop.eup %138  ;;  %v41_v13 = vmul.f32 0.6931472, %v137_v9 }
  0x32   :  { %v43_v15 = vmul.f32 0.6931472, %v139_v12 }
  0x33   :  { %v44_v20 = vmax.f32 %v41_v13, -100.0 }
  0x34   :  { %v141_v18 = vpop.eup %140  ;;  %v45_v23 = vmax.f32 %v43_v15, -100.0 }
  0x35   :  { %v143_v22 = vpop.eup %142  ;;  %v50_v24 = vmul.f32 0.6931472, %v141_v18  ;;  %v68_v31 = vmul.f32 %v44_v20, %v38_v16 }
  0x36   :  { %v59_v25 = vmul.f32 0.6931472, %v143_v22  ;;  %v69_v33 = vmul.f32 %v45_v23, %v39_v19 }
  0x37   :  { %v56_v27 = vsel %vm55_vm0, %v53_v17, %v50_v24 }
  0x38   :  { %v65_v29 = vsel %vm64_vm1, %v62_v21, %v59_v25  ;;  %v66_v30 = vmax.f32 %v56_v27, -100.0 }
  0x39   :  { %v67_v32 = vmax.f32 %v65_v29, -100.0 }
  0x3a   :  { %v72_v34 = vmul.f32 %v70_v26, %v66_v30 }
  0x3b   :  { %v73_v35 = vmul.f32 %v71_v28, %v67_v32 }
  0x3c   :  { %v74_v36 = vadd.f32 %v72_v34, %v68_v31 }
  0x3d   :  { %v75_v37 = vadd.f32 %v73_v35, %v69_v33 }
  0x3e   :  { %v76_v38 = vsub.f32 0.0, %v74_v36 }
  0x3f   :  { %v77_v39 = vsub.f32 0.0, %v75_v37 }
  0x40   :  { %v78_v40 = vsub.f32 0.0, %v76_v38 }
  0x41   :  { %v79_v41 = vsub.f32 0.0, %v77_v39 }
  0x42   :  { %v80_v42 = vmul.f32 1.442695, %v78_v40 }
  0x43   :  { %v82_v43 = vmul.f32 1.442695, %v79_v41 }
  0x44   :  { %144 = vpow2.f32 %v80_v42 }
  0x45   :  { %146 = vpow2.f32 %v82_v43 }
  0x4e   :  { %v145_v44 = vpop.eup %144 }
  0x4f   :  { %v147_v45 = vpop.eup %146  ;;  %v84_v46 = vsub.f32 1.0, %v145_v44 }
  0x50   :  { %v85_v47 = vsub.f32 1.0, %v147_v45 }
  0x51   :  { %v86_v48 = vmul.f32 %v84_v46, %v84_v46 }
  0x52   :  { %v87_v49 = vmul.f32 %v85_v47, %v85_v47 }
  0x53   :  { %v88_v50 = vmul.f32 %v86_v48, %v76_v38 }
  0x54   :  { %v89_v51 = vmul.f32 %v87_v49, %v77_v39 }
  0x55   :  { %v92_v52 = vcombine.high %v88_v50, %v88_v50  ;;  %v97_v53 = vsel %vm96_vm2, %v88_v50, 0.0 }
  0x56   :  { %v93_v54 = vcombine.high %v89_v51, %v89_v51  ;;  %v100_v56 = vsel %vm96_vm2, %v89_v51, 0.0 }
  0x57   :  { %v98_v55 = vsel %vm96_vm2, %v92_v52, 0.0 }
  0x58   :  { %v99_v57 = vadd.f32 %v98_v55, %v97_v53  ;;  %v102_v58 = vsel %vm96_vm2, %v93_v54, 0.0 }
  0x5a   :  { %v101_v59 = vadd.f32 %v100_v56, %v99_v57 }
  0x5c   :  { %v103_v60 = vadd.f32 %v102_v58, %v101_v59 }
  0x5e   :  { %104 = vadd.xlane.f32.xlu0 %v103_v60 }
  0xeb   :  { %v105_v61 = vpop.xlane.xlu0 %104 }
  0xec   :  { %v106_v62 = vrot.slane %v105_v61, 4 }
  0xee   :  { %v107_v63 = vadd.f32 %v106_v62, %v105_v61 }
  0xf0   :  { %v108_v0 = vrot.slane %v107_v63, 2 }
  0xf2   :  { %v109_v1 = vadd.f32 %v108_v0, %v107_v63 }
  0xf4   :  { %v110_v2 = vrot.slane %v109_v1, 1 }
  0xf6   :  { %v111_v3 = vadd.f32 %v110_v2, %v109_v1 }
  0xf8   :  { %131 = vpush %v111_v3 }
 0x129   :  { %s132_s5 = spop %131 }
 0x12a   :  { %v113_v4 = vstv %s132_s5 }
 0x12b   :  { %114 = vst [vmem:[#allocation7] sm:$0x1] %v113_v4 }
 0x12c   :  { %203 = shalt.err (!%p200_p6)
}
 0x12d   :  { %s204_s10 = scalar_lea.hbm %s276_s2, 16 }
 0x12e   :  { %p205_p7 = scmp.ne.s32.totalorder %s276_s2, %s204_s10  ;;  %p208_p8 = scmp.lt.u32.totalorder %s204_s10, %s276_s2 }
 0x130   :  { %p210_p9 = pnand %p208_p8, %p205_p7 }
 0x132   :  { %213 = shalt.err (!%p210_p9)
}
 0x133   :  { %124 = dma.vmem_to_hbm [thread:$0]  %s122_s4, 16, %s276_s2, [#allocation4]  }
 0x134   :  { %218 = dma.done.wait [#allocation4], 16  }
 0x135   :  { %219 = vsyncadd [#allocation4], 4294967280 }
 0x136   :  { %128 = vsyncpa [#allocation3], 1 }
 0x137   :  { %129 = vsyncpa [#allocation6], 1 }
 0x138   :  { %130 = vsyncpa [#allocation4], 1 }

</bundles_post_ra>
